<compile_context>
chip_gen: v6e
topology: v6e:2x2x1
jax: 0.10.0
libtpu: 0.0.40
codegen_flags: <defaults>
</compile_context>

<pallas_src>
import jax
import jax.numpy as jnp
from jax import lax
from jax.experimental import pallas as pl
from jax.experimental.pallas import tpu as pltpu

# torchvision rgb_to_grayscale weights (plain Python floats)
_GRAY_W = (0.2989, 0.587, 0.114)


def _chip_config():
    """Generation-aware tiling knobs.

    budget    : target bytes of (input block + output block), single-buffered,
                per grid step.
    min_steps : minimum number of grid steps to keep (>=2 per TensorCore on
                the dual-core v7x; 1 on single-TC v5e/v6e where bigger blocks
                amortize the ~0.35us/step overhead best).
    """
    kind = ""
    try:
        kind = jax.devices()[0].device_kind.lower()
    except Exception:
        pass
    if "v7" in kind or "7x" in kind:
        return {"budget": 7 * (1 << 20), "min_steps": 4}
    if "v6" in kind:
        return {"budget": 12 * (1 << 20), "min_steps": 1}
    if "v5" in kind:
        return {"budget": 4 * (1 << 20), "min_steps": 1}
    # Unknown / older generation: conservative blocks, keep a little pipelining.
    return {"budget": 4 * (1 << 20), "min_steps": 2}


def _make_transpose_affine_kernel(bt, total_b, c_in, c_out, A, bias,
                                  transpose_first):
    """Builds a kernel computing, for each valid image i of the batch tile:

        out[i, c, h, w] = sum_j A[c][j] * x[i, j, w, h] + bias[c]   (float32)

    A (c_out x c_in) and bias (c_out) are static Python floats baked in as
    immediates.  The (W,H)->(H,W) spatial transpose is done in-kernel (XLU).
    """

    def kernel(x_ref, o_ref):
        def one_image(i):
            cache = {}  # transposed f32 planes, shared across output channels

            def get_xT(j):
                if j not in cache:
                    plane = x_ref[i, j, :, :]
                    if transpose_first:
                        # transpose at native width (bf16 packed rows), then
                        # cast — the cast fuses into the following VPU mul.
                        cache[j] = jnp.transpose(plane).astype(jnp.float32)
                    else:
                        # integer inputs (e.g. uint8): cast first (safe path).
                        cache[j] = jnp.transpose(plane.astype(jnp.float32))
                return cache[j]

            for c in range(c_out):
                terms = [(j, A[c][j]) for j in range(c_in) if A[c][j] != 0.0]
                assert terms, "each output channel needs a nonzero weight"
                j0, w0 = terms[0]
                acc = get_xT(j0) if w0 == 1.0 else get_xT(j0) * w0
                for j, w in terms[1:]:
                    acc = acc + (get_xT(j) if w == 1.0 else get_xT(j) * w)
                if bias[c] != 0.0:
                    acc = acc + bias[c]
                o_ref[i, c, :, :] = acc

        if bt == 1:
            one_image(0)
        else:
            if total_b % bt == 0:
                nrows = bt  # static trip count
            else:
                # short last block: only touch valid images of the tile
                nrows = jnp.minimum(bt, total_b - pl.program_id(0) * bt)

            def body(i, carry):
                one_image(i)
                return carry

            lax.fori_loop(0, nrows, body, 0)

    return kernel


def _transpose_affine(x_planar, c_out, A, bias):
    """x_planar: [B, c_in, W, H] (any real dtype) -> float32 [B, c_out, H, W]."""
    B, c_in, W, H = x_planar.shape
    cfg = _chip_config()

    in_b = c_in * W * H * x_planar.dtype.itemsize
    out_b = c_out * H * W * 4
    per_b = in_b + out_b

    max_bt = max(1, cfg["budget"] // per_b)
    if cfg["min_steps"] > 1:
        max_bt = min(max_bt, max(1, B // cfg["min_steps"]))
    bt = int(max(1, min(max_bt, B)))
    grid = pl.cdiv(B, bt)

    # VMEM footprint: double-buffered in/out blocks + per-image kernel
    # intermediates (cached transposed f32 planes + accumulator + cast temp).
    interm = (c_in + 2) * H * W * 4
    vmem_need = 2 * bt * per_b + interm + 2 * (1 << 20)
    vmem_limit = int(min(max(vmem_need, 16 * (1 << 20)), 64 * (1 << 20)))

    transpose_first = bool(jnp.issubdtype(x_planar.dtype, jnp.floating))
    kernel = _make_transpose_affine_kernel(bt, B, c_in, c_out, A, bias,
                                           transpose_first)

    return pl.pallas_call(
        kernel,
        out_shape=jax.ShapeDtypeStruct((B, c_out, H, W), jnp.float32),
        grid=(grid,),
        in_specs=[pl.BlockSpec((bt, c_in, W, H), lambda i: (i, 0, 0, 0))],
        out_specs=pl.BlockSpec((bt, c_out, H, W), lambda i: (i, 0, 0, 0)),
        compiler_params=pltpu.CompilerParams(
            dimension_semantics=("parallel",),
            vmem_limit_bytes=vmem_limit,
        ),
    )(x_planar)


class InputPallas:
    """Pallas/JAX port of the PyTorch `Input` preprocessing module."""

    def __init__(self, img_channels=3, img_size=(224, 224),
                 mean=(0.485, 0.456, 0.406), std=(0.229, 0.224, 0.225)):
        assert img_channels in (1, 3), (
            f"Either image channels is equal to 3 or equal to 1 "
            f"Never equal to {img_channels}")
        self.img_channels = img_channels
        self.img_size = list(img_size)
        self.mean = [float(m) for m in mean]
        self.std = [float(s) for s in std]

    def __call__(self, x):
        assert x.shape[-1] in (1, 3), (
            f"Expected 1 or 3 as image channels, but {x.shape[-1]} is got.")
        B, W, H, C = x.shape
        if [H, W] != self.img_size:
            # TODO(synk): bilinear/antialiased TF.resize path not implemented.
            raise NotImplementedError("resize path not implemented")

        if C == 1 and self.img_channels == 3:
            # cat([x,x,x]) -> normalize(mean,std) -> /255, all folded into one
            # per-channel FMA; single HBM pass: the gray plane is fetched once
            # per step and all 3 output channels are produced from it.
            # [B,W,H,1] -> [B,1,W,H] is a free (size-1 dim) reshape.
            xp = jnp.reshape(x, (B, 1, W, H))
            A = [[1.0 / (self.std[c] * 255.0)] for c in range(3)]
            bias = [-self.mean[c] / (self.std[c] * 255.0) for c in range(3)]
            return _transpose_affine(xp, 3, A, bias)

        elif C == 3 and self.img_channels == 1:
            # rgb_to_grayscale -> /255.  The weighted contraction over the
            # 3-wide minor (lane) channel dim stays as one fused XLA einsum
            # (reads 3N, writes N — cheaper than a planar moveaxis pre-pass);
            # the transpose, /255 and f32 output are fused in the kernel.
            gw = jnp.asarray(_GRAY_W, dtype=jnp.float32)
            xg = jnp.einsum("bwhc,c->bwh", x.astype(jnp.float32), gw)
            xp = jnp.reshape(xg, (B, 1, W, H))
            return _transpose_affine(xp, 1, [[1.0 / 255.0]], [0.0])

        else:
            # Channels already match: permute + /255 + cast.
            # TODO(synk): the NHWC -> channel-planar de-interleave needs a
            # lane-stride-C gather to fuse into the kernel; it is left to XLA
            # (jnp.moveaxis, keeps the input dtype). The spatial transpose,
            # scale and f32 cast are fused in the Pallas kernel.
            xp = jnp.moveaxis(x, 3, 1)  # [B, C, W, H], original dtype
            A = [[(1.0 / 255.0) if j == c else 0.0 for j in range(C)]
                 for c in range(C)]
            bias = [0.0] * C
            return _transpose_affine(xp, C, A, bias)


if __name__ == "__main__":
    key = jax.random.PRNGKey(0)
    B, Wd, Hd = 2, 64, 64  # small, TPU-friendly spatial size
    k1, k2 = jax.random.split(key)
    x_rgb = jax.random.uniform(k1, (B, Wd, Hd, 3), jnp.float32, 0.0, 255.0)
    x_gray = jax.random.uniform(k2, (B, Wd, Hd, 1), jnp.float32, 0.0, 255.0)

    # Case A: 3-channel input, img_channels=3  (permute + /255 + cast)
    mod3 = InputPallas(img_channels=3, img_size=(Hd, Wd))
    out_a = jax.block_until_ready(mod3(x_rgb))
    ref_a = jnp.transpose(x_rgb, (0, 3, 2, 1)) / 255.0
    assert out_a.shape == (B, 3, Hd, Wd) and out_a.dtype == jnp.float32
    assert jnp.allclose(out_a, ref_a, atol=1e-5), "case A mismatch"

    # Case B: 1-channel input, img_channels=3  (repeat -> normalize -> /255)
    out_b = jax.block_until_ready(mod3(x_gray))
    xg = jnp.transpose(x_gray, (0, 3, 2, 1))
    xg3 = jnp.concatenate([xg, xg, xg], axis=1)
    mean = jnp.array([0.485, 0.456, 0.406], jnp.float32).reshape(1, 3, 1, 1)
    std = jnp.array([0.229, 0.224, 0.225], jnp.float32).reshape(1, 3, 1, 1)
    ref_b = ((xg3 - mean) / std) / 255.0
    assert out_b.shape == (B, 3, Hd, Wd) and out_b.dtype == jnp.float32
    assert jnp.allclose(out_b, ref_b, atol=1e-4), "case B mismatch"

    # Case C: 3-channel input, img_channels=1  (rgb_to_grayscale -> /255)
    mod1 = InputPallas(img_channels=1, img_size=(Hd, Wd))
    out_c = jax.block_until_ready(mod1(x_rgb))
    xr = jnp.transpose(x_rgb, (0, 3, 2, 1))
    ref_c = (0.2989 * xr[:, 0:1] + 0.587 * xr[:, 1:2]
             + 0.114 * xr[:, 2:3]) / 255.0
    assert out_c.shape == (B, 1, Hd, Wd) and out_c.dtype == jnp.float32
    assert jnp.allclose(out_c, ref_c, atol=1e-4), "case C mismatch"

    print("KERNEL_OK")
</pallas_src>

<mosaic_0001>
module attributes {stable_mosaic.version = 11 : i64} {
  func.func @kernel(%arg0: i32, %arg1: memref<1x3x64x64xf32, #tpu.memory_space<vmem>>, %arg2: memref<1x3x64x64xf32, #tpu.memory_space<vmem>>) attributes {dimension_semantics = [#tpu.dimension_semantics<parallel>], iteration_bounds = array<i64: 2>, scalar_prefetch = 0 : i64, scratch_operands = 0 : i64, tpu.core_type = #tpu.core_type<tc>, window_params = [{transform_indices = @transform_0, window_bounds = array<i64: 1, 3, 64, 64>}, {transform_indices = @transform_1, window_bounds = array<i64: 1, 3, 64, 64>}]} {
    %c0 = arith.constant 0 : index
    %c0_0 = arith.constant 0 : index
    %c0_1 = arith.constant 0 : index
    %c0_2 = arith.constant 0 : index
    %0 = vector.load %arg1[%c0, %c0_0, %c0_1, %c0_2] : memref<1x3x64x64xf32, #tpu.memory_space<vmem>>, vector<1x1x64x64xf32>
    %1 = vector.shape_cast %0 : vector<1x1x64x64xf32> to vector<64x64xf32>
    %2 = tpu.transpose %1, [1, 0] : vector<64x64xf32> -> vector<64x64xf32>
    %cst = arith.constant 0.00392156886 : f32
    %3 = vector.broadcast %cst : f32 to vector<64x64xf32>
    %4 = arith.mulf %2, %3 : vector<64x64xf32>
    %c0_3 = arith.constant 0 : index
    %c0_4 = arith.constant 0 : index
    %c0_5 = arith.constant 0 : index
    %c0_6 = arith.constant 0 : index
    %5 = vector.load %arg2[%c0_3, %c0_4, %c0_5, %c0_6] : memref<1x3x64x64xf32, #tpu.memory_space<vmem>>, vector<1x1x64x64xf32>
    %6 = vector.shape_cast %5 : vector<1x1x64x64xf32> to vector<64x64xf32>
    %7 = vector.shape_cast %4 : vector<64x64xf32> to vector<1x1x64x64xf32>
    tpu.vector_store %arg2[%c0_3, %c0_4, %c0_5, %c0_6], %7 {strides = array<i32>} : memref<1x3x64x64xf32, #tpu.memory_space<vmem>>, vector<1x1x64x64xf32>,
    %c0_7 = arith.constant 0 : index
    %c1 = arith.constant 1 : index
    %c0_8 = arith.constant 0 : index
    %c0_9 = arith.constant 0 : index
    %8 = vector.load %arg1[%c0_7, %c1, %c0_8, %c0_9] : memref<1x3x64x64xf32, #tpu.memory_space<vmem>>, vector<1x1x64x64xf32>
    %9 = vector.shape_cast %8 : vector<1x1x64x64xf32> to vector<64x64xf32>
    %10 = tpu.transpose %9, [1, 0] : vector<64x64xf32> -> vector<64x64xf32>
    %cst_10 = arith.constant 0.00392156886 : f32
    %11 = vector.broadcast %cst_10 : f32 to vector<64x64xf32>
    %12 = arith.mulf %10, %11 : vector<64x64xf32>
    %c0_11 = arith.constant 0 : index
    %c1_12 = arith.constant 1 : index
    %c0_13 = arith.constant 0 : index
    %c0_14 = arith.constant 0 : index
    %13 = vector.load %arg2[%c0_11, %c1_12, %c0_13, %c0_14] : memref<1x3x64x64xf32, #tpu.memory_space<vmem>>, vector<1x1x64x64xf32>
    %14 = vector.shape_cast %13 : vector<1x1x64x64xf32> to vector<64x64xf32>
    %15 = vector.shape_cast %12 : vector<64x64xf32> to vector<1x1x64x64xf32>
    tpu.vector_store %arg2[%c0_11, %c1_12, %c0_13, %c0_14], %15 {strides = array<i32>} : memref<1x3x64x64xf32, #tpu.memory_space<vmem>>, vector<1x1x64x64xf32>,
    %c0_15 = arith.constant 0 : index
    %c2 = arith.constant 2 : index
    %c0_16 = arith.constant 0 : index
    %c0_17 = arith.constant 0 : index
    %16 = vector.load %arg1[%c0_15, %c2, %c0_16, %c0_17] : memref<1x3x64x64xf32, #tpu.memory_space<vmem>>, vector<1x1x64x64xf32>
    %17 = vector.shape_cast %16 : vector<1x1x64x64xf32> to vector<64x64xf32>
    %18 = tpu.transpose %17, [1, 0] : vector<64x64xf32> -> vector<64x64xf32>
    %cst_18 = arith.constant 0.00392156886 : f32
    %19 = vector.broadcast %cst_18 : f32 to vector<64x64xf32>
    %20 = arith.mulf %18, %19 : vector<64x64xf32>
    %c0_19 = arith.constant 0 : index
    %c2_20 = arith.constant 2 : index
    %c0_21 = arith.constant 0 : index
    %c0_22 = arith.constant 0 : index
    %21 = vector.load %arg2[%c0_19, %c2_20, %c0_21, %c0_22] : memref<1x3x64x64xf32, #tpu.memory_space<vmem>>, vector<1x1x64x64xf32>
    %22 = vector.shape_cast %21 : vector<1x1x64x64xf32> to vector<64x64xf32>
    %23 = vector.shape_cast %20 : vector<64x64xf32> to vector<1x1x64x64xf32>
    tpu.vector_store %arg2[%c0_19, %c2_20, %c0_21, %c0_22], %23 {strides = array<i32>} : memref<1x3x64x64xf32, #tpu.memory_space<vmem>>, vector<1x1x64x64xf32>,
    return
  }
  func.func @transform_0(%arg0: i32) -> (i32, i32, i32, i32) {
    %c0_i32 = arith.constant 0 : i32
    %c0_i32_0 = arith.constant 0 : i32
    %c0_i32_1 = arith.constant 0 : i32
    %c0_i32_2 = arith.constant 0 : i32
    return %arg0, %c0_i32, %c0_i32_0, %c0_i32_1 : i32, i32, i32, i32
  }
  func.func @transform_1(%arg0: i32) -> (i32, i32, i32, i32) {
    %c0_i32 = arith.constant 0 : i32
    %c0_i32_0 = arith.constant 0 : i32
    %c0_i32_1 = arith.constant 0 : i32
    %c0_i32_2 = arith.constant 0 : i32
    return %arg0, %c0_i32, %c0_i32_0, %c0_i32_1 : i32, i32, i32, i32
  }
}

</mosaic_0001>

<bundles_post_ra>
// kernel: tpu_custom_call.1
= control target key start
LH: loop header
LB: loop body
LE: loop exit
PB: predicated region body
PF: predicated region fallthrough
CT: control target
= control target key end

     0   :  { %6 = vsyncpa [#allocation3], 0  ;;  %s829_s0 = inlined_call_operand.hbm [shape: f32[2,3,64,64], index: 0, kind: input, shape index: {}]   ;;  %s830_s1 = inlined_call_operand.hbm [shape: f32[2,3,64,64], index: 1, kind: output, shape index: {}]  }
   0x1   :  { %8 = vsyncpa [#allocation3 + $0x1], 0 }
   0x2   :  { %9 = vsyncpa [#allocation4], 0 }
   0x3   :  { %11 = vsyncpa [#allocation4 + $0x1], 0  ;;  %s600_s6 = smov 0   ;;  %s602_s7 = smov 0  }
   0x4   :  { %s604_s8 = smov 0   ;;  %s606_s9 = smov 0  }
   0x5 LB: > { %s621_s10 = sadd.s32 4294967295, %s582_s9   ;;  %s395_s11 = sadd.s32 4294967294, %s582_s9   ;;  %s582_s9 = sphi %s606_s9, %s844_s9   ;;  %s578_s8 = sphi %s604_s8, %s843_s8   ;;  %s574_s7 = sphi %s602_s7, %s842_s7   ;;  %s570_s6 = sphi %s600_s6, %s841_s6  }
   0x6   : > { %s625_s12 = sadd.s32 1, %s582_s9   ;;  %s24_s13 = sadd.s32 1, %s578_s8 }
   0x7   : > { %s21_s14 = ssub.s32 %s582_s9, %s625_s12  ;;  %p31_p0 = scmp.ne.s32.totalorder %s578_s8, %s574_s7 }
   0x8   : > { %p22_p1 = scmp.eq.s32.totalorder %s21_s14, 0  ;;  %p32_p2 = scmp.eq.s32.totalorder %s582_s9, 0 }
   0x9   : > { %p37_p3 = scmp.ne.s32.totalorder %s574_s7, %s570_s6  ;;  %p38_p4 = scmp.eq.s32.totalorder %s621_s10, 0 }
   0xa   : > { %s637_s15 = scalar_select %p22_p1, %s578_s8, %s24_s13  }
   0xb   : > { %p33_p5 = por %p32_p2, %p31_p0  ;;  %p639_p6 = por %p38_p4, %p37_p3 }
   0xc   : > { %p61_p7 = scmp.eq.s32.totalorder %s621_s10, 1  ;;  %p67_p8 = scmp.eq.s32.totalorder %s395_s11, 1 }
   0xd   : > { %s833_s16 = scalar_select %p639_p6, 1, 0 }
   0xe   : > { %p451_p10 = scmp.lt.s32.totalorder %s582_s9, 2  ;;  %p646_p11 = por %p61_p7, %p31_p0 }
   0xf   : > { %p650_p12 = por %p67_p8, %p37_p3  ;;  %s87_s19 = sand.u32 1, %s578_s8  }
  0x10   : > { %s834_s17 = scalar_select %p646_p11, 1, 0 }
  0x11   : > { %s835_s18 = scalar_select %p650_p12, 1, 0 }
  0x12   : > { %s436_s20 = smul.u32 3072, %s582_s9  ;;  %p661_p13 = pnand %p451_p10, %p33_p5 }
  0x13   : > { %s435_s21 = smul.u32 192, %s87_s19  ;;  %s667_s28 = scalar_lea.sflag [#allocation3], %s87_s19 }
  0x14   : > { %s659_s24 = scalar_lea.hbm %s829_s0, %s436_s20  ;;  %p492_p1 = pneg %p661_p13 }
  0x15   : > { %s91_s26 = scalar_lea.vmem [#allocation2], %s435_s21  ;;  %s490_s29 = scalar_lea.hbm %s659_s24, 3072 }
  0x16   : > { %s98_s27 = sshll.u32 %s91_s26, 4  ;;  %p491_p0 = scmp.ne.s32.totalorder %s659_s24, %s490_s29  ;;  %s665_s27 = int_to_ptr.vmem [resolvable:$true] %s98_s27 }
  0x17   : > { %s495_s3 = scalar_lea.hbm %s829_s0, 6144  ;;  %p496_p4 = scmp.lt.s32.totalorder %s659_s24, %s829_s0 }
  0x18   : > { %p493_p2 = pnand %p492_p1, %p491_p0  ;;  %p497_p5 = scmp.lt.s32.totalorder %s495_s3, %s490_s29 }
  0x1a   : > { %p494_p3 = pneg %p493_p2  ;;  %p498_p7 = por %p497_p5, %p496_p4 }
  0x1c   : > { %p499_p8 = pnand %p498_p7, %p494_p3 }
  0x1e   : > { %502 = shalt.err (!%p499_p8)
}
  0x1f   : > { %s503_s11 = scalar_lea.vmem %s665_s27, 3072  ;;  %s584_s13 = smov [#allocation2]  }
  0x20   : > { %p504_p10 = scmp.ne.s32.totalorder %s665_s27, %s503_s11  ;;  %s508_s14 = sshll.u32 %s584_s13, 4  ;;  %s509_s14 = int_to_ptr.vmem [resolvable:$false] %s508_s14 }
  0x21   : > { %s510_s19 = scalar_lea.vmem %s509_s14, 6144  ;;  %p511_p2 = scmp.lt.s32.totalorder %s665_s27, %s509_s14 }
  0x22   : > { %p506_p9 = pnand %p504_p10, %p492_p1  ;;  %p512_p12 = scmp.lt.s32.totalorder %s510_s19, %s503_s11 }
  0x24   : > { %p507_p0 = pneg %p506_p9  ;;  %p513_p11 = por %p512_p12, %p511_p2 }
  0x26   : > { %p514_p6 = pnand %p513_p11, %p507_p0 }
  0x28   : > { %517 = shalt.err (!%p514_p6)
}
  0x29   : > { %s585_s20 = smov 128   ;;  %s586_s21 = smov 8  }
  0x2a   : > { %446 = dma.hbm_to_vmem [thread:$0]  (!%p661_p13), %s659_s24, 3072, %s665_s27, %s667_s28, %s585_s20, %s585_s20, %s586_s21  }
  0x2b   : > { %p399_p9 = scmp.ge.s32.totalorder %s582_s9, 1  ;;  %p106_p1 = scmp.lt.s32.totalorder %s582_s9, 3 }
  0x2d   : > { %p107_p3 = pnand %p399_p9, %p106_p1 }
  0x2e   : > { %s691_s22 = sand.u32 (!%p107_p3), 1, %s574_s7   ;;  %p837_p6 = scmp.ne.s32.totalorder (!%p107_p3), %s833_s16, 0 }
  0x2f   : > { %110 = sbr.rel (%p107_p3) target bundleno = 255 (0xff), region = 24  ;;  %s113_s26 = scalar_lea.sflag (!%p107_p3), [#allocation3], %s691_s22 }
  0x30   : > { %s437_s23 = smul.u32 (!%p107_p3), 192, %s691_s22 }
  0x32   : > { %s697_s29 = scalar_lea.vmem (!%p107_p3), [#allocation2], %s437_s23 }
  0x34   : > { %561 = dma.done.wait (%p837_p6), %s113_s26, 3072  }
  0x35   : > { %563 = vsyncadd (%p837_p6), %s113_s26, 4294964224  ;;  %v135_v0 = vld [vmem:[%s697_s29] sm:$0xff]  ;;  %v136_v1 = vld [vmem:[%s697_s29 + $0x8] sm:$0xff]  ;;  %vm183_vm0 = vcmask 523264   ;;  %s729_s16 = scalar_lea.vmem [#allocation5], %s437_s23  ;;  %s438_s24 = smul.u32 3072, %s621_s10 }
  0x36   : > { %143 = vxpose.xlu0.b32.start [1/8] (short) (narrow) %v135_v0, 64  ;;  %v400_v2 = vld [vmem:[%s697_s29 + $0x40] sm:$0xff]  ;;  %v401_v3 = vld [vmem:[%s697_s29 + $0x48] sm:$0xff]  ;;  %v137_v4 = vld [vmem:[%s697_s29 + $0x10] sm:$0xff]  ;;  %s322_s25 = sshll.u32 %s729_s16, 4  ;;  %s309_s2 = scalar_lea.sflag [#allocation4], %s691_s22  ;;  %s784_s25 = int_to_ptr.vmem [resolvable:$true] %s322_s25 }
  0x37   : > { %201 = vxpose.xlu1.b32.start [1/8] (short) (narrow) %v400_v2, 64  ;;  %v402_v5 = vld [vmem:[%s697_s29 + $0x50] sm:$0xff]  ;;  %v138_v6 = vld [vmem:[%s697_s29 + $0x18] sm:$0xff]  ;;  %v139_v8 = vld [vmem:[%s697_s29 + $0x20] sm:$0xff]  ;;  %s782_s30 = scalar_lea.hbm %s830_s1, %s438_s24  ;;  %s518_s10 = scalar_lea.vmem %s784_s25, 3072 }
  0x38   : > { %v403_v7 = vld [vmem:[%s697_s29 + $0x58] sm:$0xff]  ;;  %v404_v9 = vld [vmem:[%s697_s29 + $0x60] sm:$0xff]  ;;  %v140_v10 = vld [vmem:[%s697_s29 + $0x28] sm:$0xff]  ;;  %p519_p11 = scmp.ne.s32.totalorder %s784_s25, %s518_s10  ;;  %p838_p12 = scmp.ne.s32.totalorder %s834_s17, 0 }
  0x39   : > { %v405_v11 = vld [vmem:[%s697_s29 + $0x68] sm:$0xff]  ;;  %v141_v12 = vld [vmem:[%s697_s29 + $0x30] sm:$0xff]  ;;  %v142_v14 = vld [vmem:[%s697_s29 + $0x38] sm:$0xff]  ;;  %s587_s3 = smov [#allocation5]  }
  0x3a   : > { %144 = vxpose.xlu0.b32.cont [2/8] (short) (narrow) %v136_v1, 64  ;;  %v406_v13 = vld [vmem:[%s697_s29 + $0x70] sm:$0xff]  ;;  %v407_v15 = vld [vmem:[%s697_s29 + $0x78] sm:$0xff]  ;;  %v416_v16 = vld [vmem:[%s697_s29 + $0x80] sm:$0xff]  ;;  %p520_p13 = pnand %p519_p11, %p838_p12  ;;  %s522_s4 = sshll.u32 %s587_s3, 4  ;;  %s523_s4 = int_to_ptr.vmem [resolvable:$false] %s522_s4 }
  0x3b   : > { %202 = vxpose.xlu1.b32.cont [2/8] (short) (narrow) %v401_v3, 64  ;;  %v417_v17 = vld [vmem:[%s697_s29 + $0x88] sm:$0xff]  ;;  %v418_v18 = vld [vmem:[%s697_s29 + $0x90] sm:$0xff]  ;;  %v419_v19 = vld [vmem:[%s697_s29 + $0x98] sm:$0xff]  ;;  %s524_s5 = scalar_lea.vmem %s523_s4, 6144  ;;  %p525_p5 = scmp.lt.s32.totalorder %s784_s25, %s523_s4 }
  0x3c   : > { %v420_v20 = vld [vmem:[%s697_s29 + $0xa0] sm:$0xff]  ;;  %v421_v21 = vld [vmem:[%s697_s29 + $0xa8] sm:$0xff]  ;;  %v422_v22 = vld [vmem:[%s697_s29 + $0xb0] sm:$0xff]  ;;  %p521_p4 = pneg %p520_p13  ;;  %p526_p7 = scmp.lt.s32.totalorder %s524_s5, %s518_s10 }
  0x3d   : > { %v423_v23 = vld [vmem:[%s697_s29 + $0xb8] sm:$0xff] }
  0x3e   : > { %145 = vxpose.xlu0.b32.cont [3/8] (short) (narrow) %v137_v4, 64  ;;  %p527_p8 = por %p526_p7, %p525_p5 }
  0x3f   : > { %203 = vxpose.xlu1.b32.cont [3/8] (short) (narrow) %v402_v5, 64 }
  0x40   : > { %p528_p10 = pnand %p527_p8, %p521_p4 }
  0x42   : > { %146 = vxpose.xlu0.b32.cont [4/8] (short) (narrow) %v138_v6, 64 }
  0x43   : > { %204 = vxpose.xlu1.b32.cont [4/8] (short) (narrow) %v403_v7, 64 }
  0x46   : > { %147 = vxpose.xlu0.b32.cont [5/8] (short) (narrow) %v139_v8, 64 }
  0x47   : > { %205 = vxpose.xlu1.b32.cont [5/8] (short) (narrow) %v404_v9, 64 }
  0x4a   : > { %148 = vxpose.xlu0.b32.cont [6/8] (short) (narrow) %v140_v10, 64 }
  0x4b   : > { %206 = vxpose.xlu1.b32.cont [6/8] (short) (narrow) %v405_v11, 64 }
  0x4e   : > { %149 = vxpose.xlu0.b32.cont [7/8] (short) (narrow) %v141_v12, 64 }
  0x4f   : > { %207 = vxpose.xlu1.b32.cont [7/8] (short) (narrow) %v406_v13, 64 }
  0x52   : > { %150 = vxpose.xlu0.b32.end [8/8] (short) (narrow) %v142_v14, 64 }
  0x53   : > { %208 = vxpose.xlu1.b32.end [8/8] (short) (narrow) %v407_v15, 64 }
  0x56   : > { %259 = vxpose.xlu0.b32.start [1/8] (short) (narrow) %v416_v16, 64 }
  0x5a   : > { %260 = vxpose.xlu0.b32.cont [2/8] (short) (narrow) %v417_v17, 64 }
  0x5e   : > { %261 = vxpose.xlu0.b32.cont [3/8] (short) (narrow) %v418_v18, 64 }
  0x62   : > { %262 = vxpose.xlu0.b32.cont [4/8] (short) (narrow) %v419_v19, 64 }
  0x66   : > { %263 = vxpose.xlu0.b32.cont [5/8] (short) (narrow) %v420_v20, 64 }
  0x6a   : > { %264 = vxpose.xlu0.b32.cont [6/8] (short) (narrow) %v421_v21, 64 }
  0x6e   : > { %265 = vxpose.xlu0.b32.cont [7/8] (short) (narrow) %v422_v22, 64 }
  0x72   : > { %266 = vxpose.xlu0.b32.end [8/8] (short) (narrow) %v423_v23, 64 }
  0xb2   : > { %v159_v24 = vpop.trf.xlu0 }
  0xb3   : > { %v175_v25 = vmul.f32 0.003921569, %v159_v24  ;;  %v217_v26 = vpop.trf.xlu1 }
  0xb4   : > { %v233_v27 = vmul.f32 0.003921569, %v217_v26 }
  0xb5   : > { %184 = vst.msk [vmem:[%s729_s16] sm:$0xff] %vm183_vm0, %v175_v25 }
  0xb6   : > { %v160_v28 = vpop.trf.xlu0  ;;  %408 = vst.msk [vmem:[%s729_s16 + $0x40] sm:$0xff] %vm183_vm0, %v233_v27 }
  0xb7   : > { %v176_v29 = vmul.f32 0.003921569, %v160_v28  ;;  %v218_v30 = vpop.trf.xlu1 }
  0xb8   : > { %v234_v31 = vmul.f32 0.003921569, %v218_v30 }
  0xb9   : > { %185 = vst.msk [vmem:[%s729_s16 + $0x8] sm:$0xff] %vm183_vm0, %v176_v29 }
  0xba   : > { %v161_v32 = vpop.trf.xlu0  ;;  %409 = vst.msk [vmem:[%s729_s16 + $0x48] sm:$0xff] %vm183_vm0, %v234_v31 }
  0xbb   : > { %v177_v33 = vmul.f32 0.003921569, %v161_v32  ;;  %v219_v34 = vpop.trf.xlu1 }
  0xbc   : > { %v235_v35 = vmul.f32 0.003921569, %v219_v34 }
  0xbd   : > { %186 = vst.msk [vmem:[%s729_s16 + $0x10] sm:$0xff] %vm183_vm0, %v177_v33 }
  0xbe   : > { %v162_v36 = vpop.trf.xlu0  ;;  %410 = vst.msk [vmem:[%s729_s16 + $0x50] sm:$0xff] %vm183_vm0, %v235_v35 }
  0xbf   : > { %v178_v37 = vmul.f32 0.003921569, %v162_v36  ;;  %v220_v38 = vpop.trf.xlu1 }
  0xc0   : > { %v236_v39 = vmul.f32 0.003921569, %v220_v38 }
  0xc1   : > { %187 = vst.msk [vmem:[%s729_s16 + $0x18] sm:$0xff] %vm183_vm0, %v178_v37 }
  0xc2   : > { %v163_v40 = vpop.trf.xlu0  ;;  %411 = vst.msk [vmem:[%s729_s16 + $0x58] sm:$0xff] %vm183_vm0, %v236_v39 }
  0xc3   : > { %v179_v41 = vmul.f32 0.003921569, %v163_v40  ;;  %v221_v42 = vpop.trf.xlu1 }
  0xc4   : > { %v237_v43 = vmul.f32 0.003921569, %v221_v42 }
  0xc5   : > { %188 = vst.msk [vmem:[%s729_s16 + $0x20] sm:$0xff] %vm183_vm0, %v179_v41 }
  0xc6   : > { %v164_v44 = vpop.trf.xlu0  ;;  %412 = vst.msk [vmem:[%s729_s16 + $0x60] sm:$0xff] %vm183_vm0, %v237_v43 }
  0xc7   : > { %v180_v45 = vmul.f32 0.003921569, %v164_v44  ;;  %v222_v46 = vpop.trf.xlu1 }
  0xc8   : > { %v238_v47 = vmul.f32 0.003921569, %v222_v46 }
  0xc9   : > { %189 = vst.msk [vmem:[%s729_s16 + $0x28] sm:$0xff] %vm183_vm0, %v180_v45 }
  0xca   : > { %v165_v48 = vpop.trf.xlu0  ;;  %413 = vst.msk [vmem:[%s729_s16 + $0x68] sm:$0xff] %vm183_vm0, %v238_v47 }
  0xcb   : > { %v181_v49 = vmul.f32 0.003921569, %v165_v48  ;;  %v223_v50 = vpop.trf.xlu1 }
  0xcc   : > { %v239_v51 = vmul.f32 0.003921569, %v223_v50 }
  0xcd   : > { %190 = vst.msk [vmem:[%s729_s16 + $0x30] sm:$0xff] %vm183_vm0, %v181_v49 }
  0xce   : > { %v166_v52 = vpop.trf.xlu0  ;;  %414 = vst.msk [vmem:[%s729_s16 + $0x70] sm:$0xff] %vm183_vm0, %v239_v51 }
  0xcf   : > { %v182_v53 = vmul.f32 0.003921569, %v166_v52  ;;  %v224_v54 = vpop.trf.xlu1 }
  0xd0   : > { %v240_v55 = vmul.f32 0.003921569, %v224_v54 }
  0xd1   : > { %191 = vst.msk [vmem:[%s729_s16 + $0x38] sm:$0xff] %vm183_vm0, %v182_v53 }
  0xd2   : > { %v275_v56 = vpop.trf.xlu0  ;;  %415 = vst.msk [vmem:[%s729_s16 + $0x78] sm:$0xff] %vm183_vm0, %v240_v55 }
  0xd3   : > { %v291_v57 = vmul.f32 0.003921569, %v275_v56 }
  0xd5   : > { %424 = vst.msk [vmem:[%s729_s16 + $0x80] sm:$0xff] %vm183_vm0, %v291_v57 }
  0xd6   : > { %v276_v58 = vpop.trf.xlu0 }
  0xd7   : > { %v292_v59 = vmul.f32 0.003921569, %v276_v58 }
  0xd9   : > { %425 = vst.msk [vmem:[%s729_s16 + $0x88] sm:$0xff] %vm183_vm0, %v292_v59 }
  0xda   : > { %v277_v60 = vpop.trf.xlu0 }
  0xdb   : > { %v293_v61 = vmul.f32 0.003921569, %v277_v60 }
  0xdd   : > { %426 = vst.msk [vmem:[%s729_s16 + $0x90] sm:$0xff] %vm183_vm0, %v293_v61 }
  0xde   : > { %v278_v62 = vpop.trf.xlu0 }
  0xdf   : > { %v294_v63 = vmul.f32 0.003921569, %v278_v62 }
  0xe1   : > { %427 = vst.msk [vmem:[%s729_s16 + $0x98] sm:$0xff] %vm183_vm0, %v294_v63 }
  0xe2   : > { %v279_v0 = vpop.trf.xlu0 }
  0xe3   : > { %v295_v1 = vmul.f32 0.003921569, %v279_v0 }
  0xe5   : > { %428 = vst.msk [vmem:[%s729_s16 + $0xa0] sm:$0xff] %vm183_vm0, %v295_v1 }
  0xe6   : > { %v280_v2 = vpop.trf.xlu0 }
  0xe7   : > { %v296_v3 = vmul.f32 0.003921569, %v280_v2 }
  0xe9   : > { %429 = vst.msk [vmem:[%s729_s16 + $0xa8] sm:$0xff] %vm183_vm0, %v296_v3 }
  0xea   : > { %v281_v4 = vpop.trf.xlu0 }
  0xeb   : > { %v297_v5 = vmul.f32 0.003921569, %v281_v4 }
  0xed   : > { %430 = vst.msk [vmem:[%s729_s16 + $0xb0] sm:$0xff] %vm183_vm0, %v297_v5 }
  0xee   : > { %v282_v6 = vpop.trf.xlu0 }
  0xef   : > { %v298_v7 = vmul.f32 0.003921569, %v282_v6 }
  0xf1   : > { %431 = vst.msk [vmem:[%s729_s16 + $0xb8] sm:$0xff] %vm183_vm0, %v298_v7 }
  0xf2   : > { %531 = shalt.err (!%p528_p10)
}
  0xf3   : > { %s532_s11 = scalar_lea.hbm %s782_s30, 3072  ;;  %s536_s19 = scalar_lea.hbm %s830_s1, 6144 }
  0xf4   : > { %p533_p0 = scmp.ne.s32.totalorder %s782_s30, %s532_s11  ;;  %p537_p1 = scmp.lt.s32.totalorder %s782_s30, %s830_s1 }
  0xf5   : > { %p538_p3 = scmp.lt.s32.totalorder %s536_s19, %s532_s11 }
  0xf6   : > { %p534_p2 = pnand %p533_p0, %p838_p12 }
  0xf7   : > { %p539_p6 = por %p538_p3, %p537_p1 }
  0xf8   : > { %p535_p9 = pneg %p534_p2 }
  0xfa   : > { %p540_p11 = pnand %p539_p6, %p535_p9 }
  0xfc   : > { %543 = shalt.err (!%p540_p11)
}
  0xfd   : > { %s588_s23 = smov 128   ;;  %s589_s26 = smov 8  }
  0xfe   : > { %441 = dma.vmem_to_hbm [thread:$0]  (%p838_p12), %s784_s25, 3072, %s782_s30, %s309_s2, %s588_s23, %s588_s23, %s589_s26  }
  0xff PF: > { %s337_s29 = sand.u32 1, %s570_s6   ;;  %p839_p13 = scmp.ne.s32.totalorder %s835_s18, 0 }
 0x100   : > { %p840_p4 = scmp.ge.s32.totalorder %s582_s9, 2  ;;  %s338_s16 = scalar_lea.sflag [#allocation4], %s337_s29 }
 0x102   : > { %p448_p5 = pnand %p840_p4, %p839_p13 }
 0x104   : > { %p449_p7 = pneg %p448_p5 }
 0x106   : > { %565 = dma.done.wait (%p449_p7), %s338_s16, 3072  }
 0x107   : > { %567 = vsyncadd (%p449_p7), %s338_s16, 4294964224  ;;  %p14_p8 = scmp.ge.s32.totalorder %s625_s12, 4   ;;  %s841_s6 = smov %s574_s7 }
 0x108   : > { %s842_s7 = smov %s578_s8  ;;  %s843_s8 = smov %s637_s15 }
 0x109   : > { %s844_s9 = smov %s625_s12  ;;  %16 = sbr.rel (!%p14_p8) target bundleno = 5 (0x5), region = 73 }
 0x10e   :  { %343 = vsyncpa [#allocation3], 1 }
 0x10f   :  { %345 = vsyncpa [#allocation3 + $0x1], 1 }
 0x110   :  { %346 = vsyncpa [#allocation4], 1 }
 0x111   :  { %348 = vsyncpa [#allocation4 + $0x1], 1 }

</bundles_post_ra>
